<compile_context>
chip_gen: v6e
topology: v6e:2x2x1
jax: 0.10.0
libtpu: 0.0.40
codegen_flags: <defaults>
</compile_context>

<pallas_src>
import jax
import jax.numpy as jnp
from jax.experimental import pallas as pl
from jax.experimental.pallas import tpu as pltpu


def _round_up(x, m):
    return ((x + m - 1) // m) * m


def _nll_partial_sum_kernel(pred_ref, tgt_ref, out_ref):
    # pred_ref: (TILE_N, C) f32 log-probs; tgt_ref: (TILE_N, 1) i32;
    # out_ref:  (1, 128) f32 partial-sum block owned by this parallel slice.
    @pl.when(pl.program_id(1) == 0)
    def _init():
        out_ref[...] = jnp.zeros_like(out_ref)

    pred = pred_ref[...]
    tgt = tgt_ref[...]                                              # (TILE_N, 1)
    class_ids = jax.lax.broadcasted_iota(jnp.int32, pred.shape, 1)  # (TILE_N, C)
    picked = jnp.where(class_ids == tgt, pred, 0.0)                 # select, no mul
    out_ref[...] += jnp.sum(picked)                                 # scalar broadcast


def combined_loss(pred, target, trans_feat=None, *, tile_n=None, num_cores=2):
    """JAX/Pallas equivalent of CombinedLoss.forward (trans_feat is unused)."""
    del trans_feat  # the reference module ignores it
    # TODO(synk): fusing the upstream log_softmax (accepting raw logits) would halve
    # HBM traffic, but this module's interface already takes log-probabilities.
    n, c = pred.shape
    pred = pred.astype(jnp.float32)
    target = target.astype(jnp.int32)

    if tile_n is None:
        tile_n = min(512, _round_up(n, 8))
    tile_n = max(8, _round_up(int(tile_n), 8))

    n_tiles = pl.cdiv(n, tile_n)
    tiles_per_core = max(1, pl.cdiv(n_tiles, num_cores))
    n_pad = num_cores * tiles_per_core * tile_n

    if n_pad != n:
        pred = jnp.pad(pred, ((0, n_pad - n), (0, 0)))
        # padded targets = -1 never match any class id -> contribute exactly 0
        target = jnp.pad(target, (0, n_pad - n), constant_values=-1)
    target2d = target.reshape(n_pad, 1)

    # VMEM budget: pred tile (lane-padded C) + lane-padded target tile, x2 buffers, + slack.
    lane_c = _round_up(c, 128)
    tile_bytes = tile_n * lane_c * 4 + tile_n * 128 * 4
    vmem_limit = int(min(96 * 1024 * 1024, max(8 * 1024 * 1024, 8 * tile_bytes)))

    cost = pl.CostEstimate(
        flops=2 * n_pad * c,
        transcendentals=0,
        bytes_accessed=n_pad * c * 4 + n_pad * 4 + num_cores * 128 * 4,
    )

    partials = pl.pallas_call(
        _nll_partial_sum_kernel,
        out_shape=jax.ShapeDtypeStruct((1, num_cores * 128), jnp.float32),
        grid_spec=pltpu.PrefetchScalarGridSpec(
            num_scalar_prefetch=0,
            grid=(num_cores, tiles_per_core),
            in_specs=[
                pl.BlockSpec((tile_n, c), lambda p, i: (p * tiles_per_core + i, 0)),
                pl.BlockSpec((tile_n, 1), lambda p, i: (p * tiles_per_core + i, 0)),
            ],
            out_specs=pl.BlockSpec((1, 128), lambda p, i: (0, p)),
        ),
        compiler_params=pltpu.CompilerParams(
            dimension_semantics=("parallel", "arbitrary"),
            vmem_limit_bytes=vmem_limit,
        ),
        cost_estimate=cost,
    )(pred, target2d)

    per_core = partials.reshape(num_cores, 128)[:, 0]   # every lane holds the partial
    # mean over the real (unpadded) N; -1/N folded into a constant multiply
    # TODO(synk): PyTorch's ignore_index=-100 / non-ignored-count divisor is not
    # modeled; the reference module never uses it (targets are valid class ids).
    return jnp.sum(per_core) * (-1.0 / n)


if __name__ == "__main__":
    key = jax.random.PRNGKey(0)
    k1, k2, k3 = jax.random.split(key, 3)

    N, C = 32, 40  # PointNet2-cls style: batch of 32 samples, 40 classes (ModelNet40)
    logits = jax.random.normal(k1, (N, C), dtype=jnp.float32)
    pred = jax.nn.log_softmax(logits, axis=-1)          # module expects log-probabilities
    target = jax.random.randint(k2, (N,), 0, C, dtype=jnp.int32)
    trans_feat = jax.random.normal(k3, (N, 3, 3), dtype=jnp.float32)  # unused by the loss

    ref = -jnp.mean(pred[jnp.arange(N), target])

    # small tile -> exercises the (parallel, arbitrary) grid + accumulator path
    loss_tiled = jax.block_until_ready(combined_loss(pred, target, trans_feat, tile_n=8))
    # default tile sizing path
    loss_default = jax.block_until_ready(combined_loss(pred, target, trans_feat))

    assert jnp.allclose(loss_tiled, ref, rtol=1e-5, atol=1e-6), (loss_tiled, ref)
    assert jnp.allclose(loss_default, ref, rtol=1e-5, atol=1e-6), (loss_default, ref)

    print("KERNEL_OK")
</pallas_src>

<mosaic_0001>
module attributes {stable_mosaic.version = 11 : i64} {
  func.func @_nll_partial_sum_kernel(%arg0: i32, %arg1: i32, %arg2: memref<8x40xf32, #tpu.memory_space<vmem>>, %arg3: memref<8x1xi32, #tpu.memory_space<vmem>>, %arg4: memref<1x128xf32, #tpu.memory_space<vmem>>) attributes {dimension_semantics = [#tpu.dimension_semantics<parallel>, #tpu.dimension_semantics<arbitrary>], iteration_bounds = array<i64: 2, 2>, scalar_prefetch = 0 : i64, scratch_operands = 0 : i64, tpu.core_type = #tpu.core_type<tc>, window_params = [{transform_indices = @transform_0, window_bounds = array<i64: 8, 40>}, {transform_indices = @transform_1, window_bounds = array<i64: 8, 1>}, {transform_indices = @transform_2, window_bounds = array<i64: 1, 128>}]} {
    %c0_i32 = arith.constant 0 : i32
    %0 = arith.cmpi eq, %arg1, %c0_i32 : i32
    %1 = arith.extui %0 : i1 to i32
    %c0_i32_0 = arith.constant 0 : i32
    %2 = arith.cmpi ne, %1, %c0_i32_0 : i32
    scf.if %2 {
      %cst_9 = arith.constant 0.000000e+00 : f32
      %18 = vector.broadcast %cst_9 : f32 to vector<1x128xf32>
      %c0_10 = arith.constant 0 : index
      %c0_11 = arith.constant 0 : index
      %19 = vector.load %arg4[%c0_10, %c0_11] : memref<1x128xf32, #tpu.memory_space<vmem>>, vector<1x128xf32>
      tpu.vector_store %arg4[%c0_10, %c0_11], %18 {strides = array<i32>} : memref<1x128xf32, #tpu.memory_space<vmem>>, vector<1x128xf32>,
    } else {
    }
    %c0 = arith.constant 0 : index
    %c0_1 = arith.constant 0 : index
    %3 = vector.load %arg2[%c0, %c0_1] : memref<8x40xf32, #tpu.memory_space<vmem>>, vector<8x40xf32>
    %c0_2 = arith.constant 0 : index
    %c0_3 = arith.constant 0 : index
    %4 = vector.load %arg3[%c0_2, %c0_3] : memref<8x1xi32, #tpu.memory_space<vmem>>, vector<8x1xi32>
    %5 = tpu.iota {dimensions = array<i32: 1>} : vector<8x40xi32>
    %6 = vector.broadcast %4 : vector<8x1xi32> to vector<8x40xi32>
    %7 = arith.cmpi eq, %5, %6 : vector<8x40xi32>
    %cst = arith.constant 0.000000e+00 : f32
    %8 = vector.broadcast %cst : f32 to vector<8x40xf32>
    %9 = arith.select %7, %3, %8 : vector<8x40xi1>, vector<8x40xf32>
    %c0_4 = arith.constant 0 : index
    %c0_5 = arith.constant 0 : index
    %10 = vector.load %arg4[%c0_4, %c0_5] : memref<1x128xf32, #tpu.memory_space<vmem>>, vector<1x128xf32>
    %11 = vector.shape_cast %9 : vector<8x40xf32> to vector<1x8x40xf32>
    %cst_6 = arith.constant dense<0.000000e+00> : vector<1xf32>
    %12 = vector.multi_reduction <add>, %11, %cst_6 [1, 2] : vector<1x8x40xf32> to vector<1xf32>
    %13 = vector.shape_cast %12 : vector<1xf32> to vector<1x1x1xf32>
    %14 = vector.extract %13[0, 0, 0] : f32 from vector<1x1x1xf32>
    %15 = vector.broadcast %14 : f32 to vector<1x128xf32>
    %16 = arith.addf %10, %15 : vector<1x128xf32>
    %c0_7 = arith.constant 0 : index
    %c0_8 = arith.constant 0 : index
    %17 = vector.load %arg4[%c0_7, %c0_8] : memref<1x128xf32, #tpu.memory_space<vmem>>, vector<1x128xf32>
    tpu.vector_store %arg4[%c0_7, %c0_8], %16 {strides = array<i32>} : memref<1x128xf32, #tpu.memory_space<vmem>>, vector<1x128xf32>,
    return
  }
  func.func @transform_0(%arg0: i32, %arg1: i32) -> (i32, i32) {
    %c2_i32 = arith.constant 2 : i32
    %0 = arith.muli %arg0, %c2_i32 : i32
    %1 = arith.addi %0, %arg1 : i32
    %c0_i32 = arith.constant 0 : i32
    %c0_i32_0 = arith.constant 0 : i32
    return %1, %c0_i32 : i32, i32
  }
  func.func @transform_1(%arg0: i32, %arg1: i32) -> (i32, i32) {
    %c2_i32 = arith.constant 2 : i32
    %0 = arith.muli %arg0, %c2_i32 : i32
    %1 = arith.addi %0, %arg1 : i32
    %c0_i32 = arith.constant 0 : i32
    %c0_i32_0 = arith.constant 0 : i32
    return %1, %c0_i32 : i32, i32
  }
  func.func @transform_2(%arg0: i32, %arg1: i32) -> (i32, i32) {
    %c0_i32 = arith.constant 0 : i32
    %c0_i32_0 = arith.constant 0 : i32
    return %c0_i32, %arg0 : i32, i32
  }
}

</mosaic_0001>

<bundles_post_ra>
// kernel: tpu_custom_call.1
= control target key start
LH: loop header
LB: loop body
LE: loop exit
PB: predicated region body
PF: predicated region fallthrough
CT: control target
= control target key end

     0   :  { %7 = vsyncpa [#allocation3], 0  ;;  %s653_s0 = inlined_call_operand.vmem [shape: f32[32,40], index: 0, kind: input, shape index: {}]   ;;  %s654_s1 = inlined_call_operand.vmem [shape: s32[32,1], index: 1, kind: input, shape index: {}]   ;;  %s655_s2 = inlined_call_operand.hbm [shape: f32[1,256], index: 2, kind: output, shape index: {}]  }
   0x1   :  { %9 = vsyncpa [#allocation3 + $0x1], 0  ;;  %s520_s9 = smov 0   ;;  %s522_s10 = smov 0  }
   0x2   :  { %s524_s11 = smov 0   ;;  %s526_s12 = smov 0  }
   0x3   :  { %s528_s13 = smov 0   ;;  %s530_s14 = smov 0  }
   0x4   :  { %s532_s15 = smov 0   ;;  %s534_s16 = smov 0  }
   0x5 LB: > { %s315_s17 = sadd.s32 4294967295, %s500_s16   ;;  %s316_s18 = sadd.s32 4294967294, %s500_s16   ;;  %s500_s16 = sphi %s534_s16, %s15_s16   ;;  %s496_s15 = sphi %s532_s15, %s664_s15   ;;  %s492_s14 = sphi %s530_s14, %s663_s14   ;;  %s488_s13 = sphi %s528_s13, %s662_s13   ;;  %s484_s12 = sphi %s526_s12, %s661_s12   ;;  %s480_s11 = sphi %s524_s11, %s660_s11   ;;  %s476_s10 = sphi %s522_s10, %s659_s10   ;;  %s472_s9 = sphi %s520_s9, %s658_s9  }
   0x6   : > { %s24_s19 = sadd.s32 1, %s492_s14  ;;  %s27_s20 = sadd.s32 1, %s496_s15 }
   0x7   : > { %p25_p0 = scmp.ge.s32.totalorder %s24_s19, 2  ;;  %p104_p1 = scmp.ne.s32.totalorder %s480_s11, %s476_s10 }
   0x8   : > { %p105_p2 = scmp.eq.s32.totalorder %s315_s17, 3  ;;  %p110_p4 = scmp.ne.s32.totalorder %s476_s10, %s472_s9 }
   0x9   : > { %s666_s19 = smov (%p25_p0, %s24_s19), 0  ;;  %s668_s20 = smov (!%p25_p0, %s27_s20), %s496_s15 }
   0xa   : > { %p569_p3 = por %p105_p2, %p104_p1  ;;  %p29_p5 = scmp.ge.s32.totalorder %s668_s20, 2 }
   0xb   : > { %p111_p6 = scmp.eq.s32.totalorder %s316_s18, 3  ;;  %p323_p7 = scmp.ge.s32.totalorder %s500_s16, 1 }
   0xc   : > { %p151_p8 = scmp.lt.s32.totalorder %s500_s16, 5  ;;  %s670_s20 = smov (%p29_p5, %s668_s20), 0 }
   0xd   : > { %p579_p9 = por %p111_p6, %p110_p4  ;;  %s91_s23 = ssub.s32 %s496_s15, %s670_s20 }
   0xe   : > { %p152_p10 = pnand %p323_p7, %p151_p8  ;;  %s94_s24 = sadd.s32 1, %s480_s11 }
   0xf   : > { %p92_p11 = scmp.eq.s32.totalorder %s91_s23, 0  ;;  %s177_s26 = sand.u32 (!%p152_p10), 1, %s476_s10  }
  0x10   : > { %155 = sbr.rel (%p152_p10) target bundleno = 373 (0x175), region = 28  ;;  %s324_s27 = sshll.u32 (!%p152_p10), %s488_s13, 1 }
  0x11   : > { %s587_s25 = scalar_select %p92_p11, %s480_s11, %s94_s24  }
  0x12   : > { %s180_s28 = sadd.s32 (!%p152_p10), %s484_s12, %s324_s27  ;;  %s600_s8 = scalar_lea.vmem (!%p152_p10), [#allocation2], %s177_s26 }
  0x13   : > { %p181_p12 = scmp.lt.s32.totalorder (!%p152_p10), %s180_s28, 3  ;;  %p328_p13 = scmp.ne.s32.totalorder (!%p152_p10), %s484_s12, 0 }
  0x15   : > { %s672_s28 = smov (!%p181_p12, %s180_s28), 3  ;;  %198 = sbr.rel (%p328_p13) target bundleno = 28 (0x1c), region = 32 }
  0x16   : > { %s325_s29 = sshll.u32 %s672_s28, 3 }
  0x17   : > { %s184_s4 = scalar_lea.vmem %s653_s0, %s325_s29  ;;  %s192_s7 = scalar_lea.vmem %s654_s1, %s325_s29 }
  0x1a   : > { %v502_v0 = vmov 0.0  }
  0x1b   : > { %199 = vst [vmem:[%s600_s8] sm:$0x1] %v502_v0 }
  0x1c PF: > { %v201_v1 = vld [vmem:[%s192_s7] sm:$0xff]  ;;  %v503_v2 = vmov 0   ;;  %v202_v3 = vlaneseq  ;;  %vm210_vm0 = vcmask 326656   ;;  %s329_s12 = sshll.u32 %s488_s13, 4  ;;  %s237_s17 = sshll.u32 %s600_s8, 4  ;;  %s238_s17 = int_to_ptr.vmem [resolvable:$true] %s237_s17 }
  0x1d   : > { %407 = vset.pattern.permute.xlu0 %v503_v2  ;;  %v200_v5 = vld [vmem:[%s184_s4] sm:$0xff]  ;;  %s235_s27 = scalar_lea.hbm %s655_s2, %s329_s12  ;;  %s225_s28 = scalar_lea.sflag [#allocation3], %s177_s26 }
  0x1e   : > { %205 = vperm.xlu0 %407, %v201_v1   ;;  %v203_v4 = vand.u32 127, %v202_v3  ;;  %s408_s29 = scalar_lea.vmem %s238_s17, 16  ;;  %s504_s30 = smov [#allocation2]  }
  0x1f   : > { %p409_p0 = scmp.ne.s32.totalorder %s238_s17, %s408_s29  ;;  %s412_s3 = sshll.u32 %s504_s30, 4  ;;  %s413_s3 = int_to_ptr.vmem [resolvable:$false] %s412_s3 }
  0x20   : > { %s414_s13 = scalar_lea.vmem %s413_s3, 32  ;;  %p415_p4 = scmp.lt.s32.totalorder %s238_s17, %s413_s3 }
  0x21   : > { %p410_p1 = pnand %p409_p0, %p569_p3  ;;  %p416_p5 = scmp.lt.s32.totalorder %s414_s13, %s408_s29 }
  0x22   : > { %v209_v16 = vld [vmem:[%s600_s8] sm:$0x1] }
  0x23   : > { %p411_p2 = pneg %p410_p1  ;;  %p417_p6 = por %p416_p5, %p415_p4 }
  0x25   : > { %p418_p7 = pnand %p417_p6, %p411_p2 }
  0x99   : > { %v206_v6 = vpop.permute.xlu0 %205 }
  0x9a   : > { %vm207_vm1 = vcmp.eq.s32.totalorder %v203_v4, %v206_v6 }
  0x9b   : > { %v208_v7 = vsel %vm207_vm1, %v200_v5, 0.0 }
  0x9c   : > { %v211_v8 = vsel %vm210_vm0, %v208_v7, 0.0 }
  0x9d   : > { %212 = vadd.xlane.f32.xlu0 %v211_v8 }
 0x126   : > { %v213_v9 = vpop.xlane.xlu0 %212 }
 0x127   : > { %v214_v10 = vrot.slane %v213_v9, 4 }
 0x129   : > { %v215_v11 = vadd.f32 %v214_v10, %v213_v9 }
 0x12b   : > { %v216_v12 = vrot.slane %v215_v11, 2 }
 0x12d   : > { %v217_v13 = vadd.f32 %v216_v12, %v215_v11 }
 0x12f   : > { %v218_v14 = vrot.slane %v217_v13, 1 }
 0x131   : > { %v219_v15 = vadd.f32 %v218_v14, %v217_v13 }
 0x133   : > { %332 = vpush %v219_v15 }
 0x164   : > { %s333_s18 = spop %332 }
 0x165   : > { %v221_v17 = vstv %s333_s18 }
 0x166   : > { %v222_v18 = vadd.f32 %v221_v17, %v209_v16 }
 0x168   : > { %223 = vst [vmem:[%s600_s8] sm:$0x1] %v222_v18 }
 0x169   : > { %421 = shalt.err (!%p418_p7)
}
 0x16a   : > { %s422_s4 = scalar_lea.hbm %s235_s27, 16  ;;  %s426_s6 = scalar_lea.hbm %s655_s2, 32 }
 0x16b   : > { %p423_p8 = scmp.ne.s32.totalorder %s235_s27, %s422_s4  ;;  %p427_p12 = scmp.lt.s32.totalorder %s235_s27, %s655_s2 }
 0x16c   : > { %p428_p13 = scmp.lt.s32.totalorder %s426_s6, %s422_s4 }
 0x16d   : > { %p424_p10 = pnand %p423_p8, %p569_p3 }
 0x16e   : > { %p429_p0 = por %p428_p13, %p427_p12 }
 0x16f   : > { %p425_p11 = pneg %p424_p10 }
 0x171   : > { %p430_p1 = pnand %p429_p0, %p425_p11 }
 0x173   : > { %433 = shalt.err (!%p430_p1)
}
 0x174   : > { %334 = dma.vmem_to_hbm [thread:$0]  (%p569_p3), %s238_s17, 16, %s235_s27, %s225_s28  }
 0x175 PF: > { %p340_p2 = scmp.ge.s32.totalorder %s500_s16, 2  ;;  %s249_s12 = sand.u32 1, %s472_s9  }
 0x176   : > { %s250_s18 = scalar_lea.sflag [#allocation3], %s249_s12 }
 0x177   : > { %p337_p4 = pnand %p340_p2, %p579_p9 }
 0x179   : > { %p338_p5 = pneg %p337_p4 }
 0x17b   : > { %467 = dma.done.wait (%p338_p5), %s250_s18, 16  }
 0x17c   : > { %469 = vsyncadd (%p338_p5), %s250_s18, 4294967280  ;;  %s15_s16 = sadd.s32 1, %s500_s16   ;;  %s658_s9 = smov %s476_s10 }
 0x17d   : > { %p12_p6 = scmp.ge.s32.totalorder %s15_s16, 6   ;;  %s659_s10 = smov %s480_s11 }
 0x17e   : > { %s660_s11 = smov %s587_s25  ;;  %s661_s12 = smov %s492_s14 }
 0x17f   : > { %s662_s13 = smov %s496_s15  ;;  %s663_s14 = smov %s666_s19 }
 0x180   : > { %s664_s15 = smov %s670_s20  ;;  %14 = sbr.rel (!%p12_p6) target bundleno = 5 (0x5), region = 70 }
 0x185   :  { %254 = vsyncpa [#allocation3], 1 }
 0x186   :  { %256 = vsyncpa [#allocation3 + $0x1], 1 }

</bundles_post_ra>
